<compile_context>
chip_gen: v7x
topology: tpu7x:2x2x1
jax: 0.10.0
libtpu: 0.0.40
codegen_flags: <defaults>
</compile_context>

<pallas_src>
import functools
import math

import numpy as np
import jax
import jax.numpy as jnp
from jax.experimental import pallas as pl
from jax.experimental.pallas import tpu as pltpu

LANE = 128                       # all channel / contraction dims padded to multiples of this
_TM = 512                        # M-tile (rows) for matmul kernels
_TM_EW = 2048                    # larger M-tile for purely elementwise kernels
_VMEM_LIMIT = 32 * 1024 * 1024   # explicit scoped-VMEM limit (>= v5e's 16 MiB default)


def _rup(n, m):
    return ((n + m - 1) // m) * m


def _padded_rows(m):
    return max(8, _rup(m, 8)) if m <= _TM else _rup(m, _TM)


def _pick_tm(mp, cap):
    if mp <= cap:
        return mp
    t = cap
    while mp % t:
        t //= 2
    return t


# ---------------------------------------------------------------------------
# In-kernel helpers
# ---------------------------------------------------------------------------
def _masked_tile_stats(y, row0, m_valid):
    """Per-tile partial BN stats (rows >= m_valid masked), padded to 8 rows for (8,128) tiling."""
    ridx = jax.lax.broadcasted_iota(jnp.int32, y.shape, 0) + row0
    ym = jnp.where(ridx < m_valid, y, 0.0)
    s = jnp.sum(ym, axis=0, keepdims=True)
    q = jnp.sum(ym * ym, axis=0, keepdims=True)
    rows = jax.lax.broadcasted_iota(jnp.int32, (8, y.shape[1]), 0)
    return jnp.where(rows == 0, s, 0.0), jnp.where(rows == 0, q, 0.0)


# ---------------------------------------------------------------------------
# Pallas kernels
# ---------------------------------------------------------------------------
def _mm_stats_kernel(x_ref, w_ref, o_ref, sum_ref, ssq_ref, *, m_valid, tm):
    """bf16 matmul (f32 accumulate) with fused per-tile BN partial statistics."""
    y = jnp.dot(x_ref[...], w_ref[...], preferred_element_type=jnp.float32)
    o_ref[...] = y.astype(o_ref.dtype)
    s8, q8 = _masked_tile_stats(y, pl.program_id(0) * tm, m_valid)
    sum_ref[...] = s8
    ssq_ref[...] = q8


def _bn_mm_stats_kernel(x_ref, s_ref, b_ref, w_ref, o_ref, sum_ref, ssq_ref, *, m_valid, tm):
    """Fused norm2-apply + ReLU prologue, 1x1 conv matmul, and BN partial stats for norm3."""
    h = jnp.maximum(x_ref[...].astype(jnp.float32) * s_ref[...] + b_ref[...], 0.0)
    y = jnp.dot(h.astype(jnp.bfloat16), w_ref[...], preferred_element_type=jnp.float32)
    o_ref[...] = y
    s8, q8 = _masked_tile_stats(y, pl.program_id(0) * tm, m_valid)
    sum_ref[...] = s8
    ssq_ref[...] = q8


def _sparse_conv3_kernel(idx_ref, src_ref, w_ref, o_ref, sum_ref, ssq_ref,
                         acc_ref, gbuf_ref, *, tm, m_valid, n_off):
    """3x3x3 sparse conv: in-kernel SMEM-indexed row gather per kernel offset, per-offset MXU
    matmul accumulated in f32, fused BN partial stats on the last offset."""
    mi = pl.program_id(0)
    k = pl.program_id(1)

    @pl.when(k == 0)
    def _():
        acc_ref[...] = jnp.zeros_like(acc_ref)

    base = mi * (tm * n_off) + k

    def gather_row(r, carry):
        s = idx_ref[base + r * n_off]                      # SMEM scalar read
        gbuf_ref[pl.ds(r, 1), :] = src_ref[pl.ds(s, 1), :]  # dynamic-row gather from VMEM source
        return carry

    jax.lax.fori_loop(0, tm, gather_row, 0)

    acc_ref[...] += jnp.dot(gbuf_ref[...].astype(jnp.bfloat16), w_ref[...],
                            preferred_element_type=jnp.float32)

    @pl.when(k == n_off - 1)
    def _():
        y = acc_ref[...]
        o_ref[...] = y.astype(o_ref.dtype)
        s8, q8 = _masked_tile_stats(y, mi * tm, m_valid)
        sum_ref[...] = s8
        ssq_ref[...] = q8


def _bn_finalize_kernel(sum_ref, ssq_ref, g_ref, b_ref, scale_ref, shift_ref, *, m_valid, eps):
    """Turn per-tile partial (sum, sumsq) rows into per-channel BN scale/shift."""
    inv_m = 1.0 / float(m_valid)
    mean = jnp.sum(sum_ref[...], axis=0, keepdims=True) * inv_m
    var = jnp.maximum(jnp.sum(ssq_ref[...], axis=0, keepdims=True) * inv_m - mean * mean, 0.0)
    sc = g_ref[...] * jax.lax.rsqrt(var + eps)
    scale_ref[...] = sc
    shift_ref[...] = b_ref[...] - mean * sc


def _bn_apply_kernel(x_ref, s_ref, b_ref, o_ref, *, relu, m_valid, tm):
    """norm1 apply + ReLU; zeroes padded rows (incl. the gather sentinel row at index m_valid)."""
    y = x_ref[...].astype(jnp.float32) * s_ref[...] + b_ref[...]
    if relu:
        y = jnp.maximum(y, 0.0)
    ridx = jax.lax.broadcasted_iota(jnp.int32, y.shape, 0) + pl.program_id(0) * tm
    o_ref[...] = jnp.where(ridx < m_valid, y, 0.0)


def _bn_add_kernel(x_ref, s_ref, b_ref, r_ref, rs_ref, rb_ref, o_ref, *, relu):
    """Fused norm3-apply + residual-branch BN-apply + add + optional final ReLU."""
    y = x_ref[...].astype(jnp.float32) * s_ref[...] + b_ref[...]
    y = y + r_ref[...].astype(jnp.float32) * rs_ref[...] + rb_ref[...]
    if relu:
        y = jnp.maximum(y, 0.0)
    o_ref[...] = y


# ---------------------------------------------------------------------------
# Pallas wrappers (jit-cached per shape)
# ---------------------------------------------------------------------------
@functools.partial(jax.jit, static_argnames=("m_valid", "out_dtype"))
def _mm_stats(x, w, *, m_valid, out_dtype):
    Mp, K = x.shape
    Co = w.shape[1]
    tm = Mp if Mp <= _TM else _TM
    T = Mp // tm
    kern = functools.partial(_mm_stats_kernel, m_valid=m_valid, tm=tm)
    return pl.pallas_call(
        kern,
        out_shape=(jax.ShapeDtypeStruct((Mp, Co), out_dtype),
                   jax.ShapeDtypeStruct((8 * T, Co), jnp.float32),
                   jax.ShapeDtypeStruct((8 * T, Co), jnp.float32)),
        grid=(T,),
        in_specs=[pl.BlockSpec((tm, K), lambda i: (i, 0)),
                  pl.BlockSpec((K, Co), lambda i: (0, 0))],
        out_specs=(pl.BlockSpec((tm, Co), lambda i: (i, 0)),
                   pl.BlockSpec((8, Co), lambda i: (i, 0)),
                   pl.BlockSpec((8, Co), lambda i: (i, 0))),
        compiler_params=pltpu.CompilerParams(dimension_semantics=("parallel",),
                                             vmem_limit_bytes=_VMEM_LIMIT),
    )(x, w)


@functools.partial(jax.jit, static_argnames=("m_valid",))
def _bn_mm_stats(x, scale, shift, w, *, m_valid):
    Mp, Ci = x.shape
    Co = w.shape[1]
    tm = Mp if Mp <= _TM else _TM
    T = Mp // tm
    kern = functools.partial(_bn_mm_stats_kernel, m_valid=m_valid, tm=tm)
    return pl.pallas_call(
        kern,
        out_shape=(jax.ShapeDtypeStruct((Mp, Co), jnp.float32),
                   jax.ShapeDtypeStruct((8 * T, Co), jnp.float32),
                   jax.ShapeDtypeStruct((8 * T, Co), jnp.float32)),
        grid=(T,),
        in_specs=[pl.BlockSpec((tm, Ci), lambda i: (i, 0)),
                  pl.BlockSpec((1, Ci), lambda i: (0, 0)),
                  pl.BlockSpec((1, Ci), lambda i: (0, 0)),
                  pl.BlockSpec((Ci, Co), lambda i: (0, 0))],
        out_specs=(pl.BlockSpec((tm, Co), lambda i: (i, 0)),
                   pl.BlockSpec((8, Co), lambda i: (i, 0)),
                   pl.BlockSpec((8, Co), lambda i: (i, 0))),
        compiler_params=pltpu.CompilerParams(dimension_semantics=("parallel",),
                                             vmem_limit_bytes=_VMEM_LIMIT),
    )(x, scale, shift, w)


@functools.partial(jax.jit, static_argnames=("m_valid",))
def _sparse_conv3(idx_flat, src, w, *, m_valid):
    """idx_flat int32 [Mp*27] (row-major (m, k), miss -> sentinel row), src f32 [Np, CP],
    w bf16 [27*CP, CoP] (per-offset padded, folded)."""
    Np, CP = src.shape
    CoP = w.shape[1]
    n_off = w.shape[0] // CP
    Mp = idx_flat.shape[0] // n_off
    tm = Mp if Mp <= _TM else _TM
    T = Mp // tm
    kern = functools.partial(_sparse_conv3_kernel, tm=tm, m_valid=m_valid, n_off=n_off)
    grid_spec = pltpu.PrefetchScalarGridSpec(
        num_scalar_prefetch=1,
        grid=(T, n_off),
        in_specs=[pl.BlockSpec((Np, CP), lambda i, k, idx: (0, 0)),     # gather source, VMEM-resident
                  pl.BlockSpec((CP, CoP), lambda i, k, idx: (k, 0))],   # per-offset weight chunk
        out_specs=(pl.BlockSpec((tm, CoP), lambda i, k, idx: (i, 0)),
                   pl.BlockSpec((8, CoP), lambda i, k, idx: (i, 0)),
                   pl.BlockSpec((8, CoP), lambda i, k, idx: (i, 0))),
        scratch_shapes=[pltpu.VMEM((tm, CoP), jnp.float32),   # f32 accumulator
                        pltpu.VMEM((tm, CP), jnp.float32)])   # gathered-rows buffer
    return pl.pallas_call(
        kern,
        out_shape=(jax.ShapeDtypeStruct((Mp, CoP), jnp.bfloat16),
                   jax.ShapeDtypeStruct((8 * T, CoP), jnp.float32),
                   jax.ShapeDtypeStruct((8 * T, CoP), jnp.float32)),
        grid_spec=grid_spec,
        compiler_params=pltpu.CompilerParams(dimension_semantics=("parallel", "arbitrary"),
                                             vmem_limit_bytes=_VMEM_LIMIT),
    )(idx_flat, src, w)


@functools.partial(jax.jit, static_argnames=("m_valid",))
def _bn_finalize(sums, ssqs, gamma, beta, *, m_valid):
    T8, C = sums.shape
    kern = functools.partial(_bn_finalize_kernel, m_valid=m_valid, eps=1e-5)
    return pl.pallas_call(
        kern,
        out_shape=(jax.ShapeDtypeStruct((1, C), jnp.float32),
                   jax.ShapeDtypeStruct((1, C), jnp.float32)),
        grid=(1,),
        in_specs=[pl.BlockSpec((T8, C), lambda i: (0, 0)),
                  pl.BlockSpec((T8, C), lambda i: (0, 0)),
                  pl.BlockSpec((1, C), lambda i: (0, 0)),
                  pl.BlockSpec((1, C), lambda i: (0, 0))],
        out_specs=(pl.BlockSpec((1, C), lambda i: (0, 0)),
                   pl.BlockSpec((1, C), lambda i: (0, 0))),
    )(sums, ssqs, gamma, beta)


@functools.partial(jax.jit, static_argnames=("relu", "m_valid"))
def _bn_apply(x, scale, shift, *, relu, m_valid):
    Mp, C = x.shape
    tm = _pick_tm(Mp, _TM_EW)
    kern = functools.partial(_bn_apply_kernel, relu=relu, m_valid=m_valid, tm=tm)
    return pl.pallas_call(
        kern,
        out_shape=jax.ShapeDtypeStruct((Mp, C), jnp.float32),
        grid=(Mp // tm,),
        in_specs=[pl.BlockSpec((tm, C), lambda i: (i, 0)),
                  pl.BlockSpec((1, C), lambda i: (0, 0)),
                  pl.BlockSpec((1, C), lambda i: (0, 0))],
        out_specs=pl.BlockSpec((tm, C), lambda i: (i, 0)),
        compiler_params=pltpu.CompilerParams(dimension_semantics=("parallel",),
                                             vmem_limit_bytes=_VMEM_LIMIT),
    )(x, scale, shift)


@functools.partial(jax.jit, static_argnames=("relu",))
def _bn_add(x, scale, shift, res, rscale, rshift, *, relu):
    Mp, C = x.shape
    tm = _pick_tm(Mp, _TM_EW)
    kern = functools.partial(_bn_add_kernel, relu=relu)
    return pl.pallas_call(
        kern,
        out_shape=jax.ShapeDtypeStruct((Mp, C), jnp.float32),
        grid=(Mp // tm,),
        in_specs=[pl.BlockSpec((tm, C), lambda i: (i, 0)),
                  pl.BlockSpec((1, C), lambda i: (0, 0)),
                  pl.BlockSpec((1, C), lambda i: (0, 0)),
                  pl.BlockSpec((tm, C), lambda i: (i, 0)),
                  pl.BlockSpec((1, C), lambda i: (0, 0)),
                  pl.BlockSpec((1, C), lambda i: (0, 0))],
        out_specs=pl.BlockSpec((tm, C), lambda i: (i, 0)),
        compiler_params=pltpu.CompilerParams(dimension_semantics=("parallel",),
                                             vmem_limit_bytes=_VMEM_LIMIT),
    )(x, scale, shift, res, rscale, rshift)


# ---------------------------------------------------------------------------
# Host-side sparse coordinate management (vectorized numpy; only index tables)
# ---------------------------------------------------------------------------
def _pack_keys(c, mins, dims):
    c = np.asarray(c, np.int64)
    k = c[..., 0] - mins[0]
    for a in range(1, 4):
        k = k * dims[a] + (c[..., a] - mins[a])
    return k


def _lookup_rows(table_coords, query_coords):
    """Vectorized exact (batch,x,y,z) lookup; returns int32 row index, miss -> len(table)."""
    table = np.asarray(table_coords, np.int64)
    query = np.asarray(query_coords, np.int64).reshape(-1, 4)
    n = table.shape[0]
    allc = np.concatenate([table, query], axis=0)
    mins = allc.min(axis=0)
    dims = allc.max(axis=0) - mins + 1
    tk = _pack_keys(table, mins, dims)
    qk = _pack_keys(query, mins, dims)
    order = np.argsort(tk, kind="stable")
    tks = tk[order]
    pos = np.minimum(np.searchsorted(tks, qk), n - 1)
    found = tks[pos] == qk
    return np.where(found, order[pos], n).astype(np.int32)


def build_kernel_map_3d(coords, tensor_stride, conv_stride, dilation, kernel_size=3):
    """Returns (out_coords [M,4] int32, idx [M, K^3] int32 with miss -> N)."""
    coords = np.asarray(coords, np.int64)
    if conv_stride == 1:
        out_coords = coords.copy()
    else:
        new_stride = tensor_stride * conv_stride
        q = coords.copy()
        q[:, 1:] = (q[:, 1:] // new_stride) * new_stride
        out_coords = np.unique(q, axis=0)
    r = kernel_size // 2
    rng = np.arange(-r, r + 1, dtype=np.int64)
    offs = np.stack(np.meshgrid(rng, rng, rng, indexing="ij"), axis=-1).reshape(-1, 3)
    step = tensor_stride * dilation
    M, K = out_coords.shape[0], offs.shape[0]
    q = np.empty((M, K, 4), np.int64)
    q[..., 0] = out_coords[:, None, 0]
    q[..., 1:] = out_coords[:, None, 1:] + offs[None, :, :] * step
    idx = _lookup_rows(coords, q).reshape(M, K)
    return out_coords.astype(np.int32), idx


# ---------------------------------------------------------------------------
# Parameters (pre-padded to 128 lanes, bf16 weights, built once at init)
# ---------------------------------------------------------------------------
class ParamGen:
    def __init__(self, seed=0):
        self.key = jax.random.PRNGKey(seed)
        self.n = 0

    def _next(self):
        self.n += 1
        return jax.random.fold_in(self.key, self.n)

    def conv1x1(self, cin, cout):
        std = math.sqrt(2.0 / cout)
        w = std * jax.random.normal(self._next(), (cin, cout), jnp.float32)
        ci, co = _rup(cin, LANE), _rup(cout, LANE)
        wp = jnp.zeros((ci, co), jnp.float32).at[:cin, :cout].set(w)
        return wp.astype(jnp.bfloat16)

    def conv3x3x3(self, cin, cout, n_off=27):
        """Folded 3x3x3 weight [27*CP, CoP], each offset chunk padded separately (matches the
        in-kernel per-offset gather layout)."""
        std = math.sqrt(2.0 / (n_off * cout))
        w = std * jax.random.normal(self._next(), (n_off, cin, cout), jnp.float32)
        ci, co = _rup(cin, LANE), _rup(cout, LANE)
        wp = jnp.zeros((n_off, ci, co), jnp.float32).at[:, :cin, :cout].set(w)
        return wp.reshape(n_off * ci, co).astype(jnp.bfloat16)

    def bn(self, c):
        cp = _rup(c, LANE)
        gamma = jnp.zeros((1, cp), jnp.float32).at[:, :c].set(1.0)  # pad lanes stay 0
        beta = jnp.zeros((1, cp), jnp.float32)
        return gamma, beta


# ---------------------------------------------------------------------------
# Modules
# ---------------------------------------------------------------------------
class DownsampleJ:
    """MinkowskiConvolution(kernel_size=1, stride=s, bias=False) + MinkowskiBatchNorm.
    Returns (conv_out, bn_scale, bn_shift); the BN apply is fused into the block's _bn_add."""

    def __init__(self, pg, cin, cout, stride):
        self.cin, self.cout, self.stride = cin, cout, stride
        self.w = pg.conv1x1(cin, cout)
        self.g, self.b = pg.bn(cout)

    def __call__(self, coords, feats, out_coords):
        N, Cin = feats.shape
        M = out_coords.shape[0]
        idx = _lookup_rows(coords, out_coords)                       # (M,), miss -> N (zero row)
        src = jnp.concatenate([feats.astype(jnp.float32),
                               jnp.zeros((1, Cin), jnp.float32)], axis=0)
        g = jnp.take(src, jnp.asarray(idx), axis=0)
        Mp, CPin = _padded_rows(M + 1), _rup(Cin, LANE)
        xp = jnp.pad(g, ((0, Mp - M), (0, CPin - Cin))).astype(jnp.bfloat16)
        y, sp, qp = _mm_stats(xp, self.w, m_valid=M, out_dtype=jnp.float32)
        s, sh = _bn_finalize(sp, qp, self.g, self.b, m_valid=M)
        return y, s, sh

    def ref(self, coords, feats, out_coords):
        Cin = feats.shape[1]
        idx = _lookup_rows(coords, out_coords)
        src = jnp.concatenate([feats.astype(jnp.float32),
                               jnp.zeros((1, Cin), jnp.float32)], axis=0)
        g = src[jnp.asarray(idx)]
        y = g @ self.w[:Cin, :self.cout].astype(jnp.float32)
        mean = jnp.mean(y, 0, keepdims=True)
        var = jnp.mean((y - mean) ** 2, 0, keepdims=True)
        return (y - mean) * jax.lax.rsqrt(var + 1e-5) * self.g[:, :self.cout] + self.b[:, :self.cout]


class BaseBottleneckJ:
    expansion = 1

    def __init__(self, pg, inplanes, planes, stride=1, dilation=1, downsample=None, no_relu=True):
        self.inplanes, self.planes = inplanes, planes
        self.stride, self.dilation = stride, dilation
        self.downsample, self.no_relu = downsample, no_relu
        self.w1 = pg.conv1x1(inplanes, planes)
        self.g1, self.b1 = pg.bn(planes)
        self.w2 = pg.conv3x3x3(planes, planes)                     # 3x3x3 folded, per-offset padded
        self.g2, self.b2 = pg.bn(planes)
        self.w3 = pg.conv1x1(planes, planes * self.expansion)
        self.g3, self.b3 = pg.bn(planes * self.expansion)

    def __call__(self, coords, feats, tensor_stride=1):
        N, Cin = feats.shape
        Cmid, Cout = self.planes, self.planes * self.expansion
        CPin, CoP = _rup(Cin, LANE), _rup(Cout, LANE)
        Np = _padded_rows(N + 1)                                    # +1: gather sentinel row
        xp = jnp.pad(feats.astype(jnp.float32),
                     ((0, Np - N), (0, CPin - Cin))).astype(jnp.bfloat16)

        # conv1 (1x1x1) with fused BN partial stats -> norm1 scale/shift -> apply + relu
        y1, s1p, q1p = _mm_stats(xp, self.w1, m_valid=N, out_dtype=jnp.bfloat16)
        s1, sh1 = _bn_finalize(s1p, q1p, self.g1, self.b1, m_valid=N)
        h1 = _bn_apply(y1, s1, sh1, relu=True, m_valid=N)           # f32, rows >= N zeroed

        # conv2 (3x3x3, stride, dilation): host kernel map, in-kernel SMEM-indexed gather,
        # per-offset MXU accumulation, fused BN partial stats for norm2
        out_coords, idx = build_kernel_map_3d(coords, tensor_stride, self.stride, self.dilation, 3)
        M = out_coords.shape[0]
        Mp = _padded_rows(M + 1)
        idx_pad = np.full((Mp, idx.shape[1]), N, np.int32)          # padded rows -> zero sentinel
        idx_pad[:M] = idx
        y2, s2p, q2p = _sparse_conv3(jnp.asarray(idx_pad.reshape(-1)), h1, self.w2, m_valid=M)
        s2, sh2 = _bn_finalize(s2p, q2p, self.g2, self.b2, m_valid=M)

        # norm2 -> relu fused as prologue of conv3 (1x1x1), plus fused BN partial stats for norm3
        y3, s3p, q3p = _bn_mm_stats(y2, s2, sh2, self.w3, m_valid=M)
        s3, sh3 = _bn_finalize(s3p, q3p, self.g3, self.b3, m_valid=M)

        # residual branch: downsample conv output + its BN scale/shift, or identity
        if self.downsample is not None:
            res, rs, rsh = self.downsample(coords, feats, out_coords)
        else:
            res = xp
            rs = jnp.ones((1, CoP), jnp.float32)
            rsh = jnp.zeros((1, CoP), jnp.float32)

        # norm3 apply + residual-BN apply + add + optional final relu, one fused kernel
        out = _bn_add(y3, s3, sh3, res, rs, rsh, relu=not self.no_relu)
        return out_coords, out[:M, :Cout]


# ---------------------------------------------------------------------------
# Pure-JAX reference (for correctness check)
# ---------------------------------------------------------------------------
def _ref_forward(block, coords, feats, tensor_stride=1):
    f = feats.astype(jnp.float32)
    Cin, Cmid = block.inplanes, block.planes
    Cout = block.planes * block.expansion

    def bn(y, g, b):
        mean = jnp.mean(y, 0, keepdims=True)
        var = jnp.mean((y - mean) ** 2, 0, keepdims=True)
        return (y - mean) * jax.lax.rsqrt(var + 1e-5) * g + b

    y = jnp.maximum(bn(f @ block.w1[:Cin, :Cmid].astype(jnp.float32),
                       block.g1[:, :Cmid], block.b1[:, :Cmid]), 0.0)
    out_coords, idx = build_kernel_map_3d(coords, tensor_stride, block.stride, block.dilation, 3)
    M, K = idx.shape
    src = jnp.concatenate([y, jnp.zeros((1, Cmid), jnp.float32)], axis=0)
    slab = src[jnp.asarray(idx)].reshape(M, K * Cmid)
    CP = block.w2.shape[0] // K
    w2 = block.w2.reshape(K, CP, -1)[:, :Cmid, :Cmid].astype(jnp.float32).reshape(K * Cmid, Cmid)
    y = jnp.maximum(bn(slab @ w2, block.g2[:, :Cmid], block.b2[:, :Cmid]), 0.0)
    y = bn(y @ block.w3[:Cmid, :Cout].astype(jnp.float32),
           block.g3[:, :Cout], block.b3[:, :Cout])
    res = (block.downsample.ref(coords, feats, out_coords)
           if block.downsample is not None else f)
    y = y + res
    if not block.no_relu:
        y = jnp.maximum(y, 0.0)
    return out_coords, y


# ---------------------------------------------------------------------------
# Main
# ---------------------------------------------------------------------------
if __name__ == "__main__":
    key = jax.random.PRNGKey(0)
    kc, kf = jax.random.split(key)
    # 2 batches, 100 unique voxels each inside a 16^3 grid.
    coords_list = []
    for b in range(2):
        kb = jax.random.fold_in(kc, b)
        cells = np.asarray(jax.random.permutation(kb, 16 * 16 * 16)[:100])
        xyz = np.stack([cells // 256, (cells // 16) % 16, cells % 16], axis=1).astype(np.int32)
        coords_list.append(np.concatenate([np.full((100, 1), b, np.int32), xyz], axis=1))
    coords = np.concatenate(coords_list, axis=0)

    inplanes = planes = 32
    feats = jax.random.normal(kf, (coords.shape[0], inplanes), jnp.float32)

    pg = ParamGen(0)

    # Config A: default BaseBottleneck (stride=1, no downsample, no_relu=True).
    blk_a = BaseBottleneckJ(pg, inplanes, planes, stride=1, downsample=None, no_relu=True)
    _, out_a = blk_a(coords, feats)
    jax.block_until_ready(out_a)
    _, ref_a = _ref_forward(blk_a, coords, feats)
    np.testing.assert_allclose(np.asarray(out_a), np.asarray(ref_a), rtol=5e-2, atol=5e-2)

    # Config B: strided bottleneck with a (1x1 conv + BN) downsample on the residual path.
    ds = DownsampleJ(pg, inplanes, planes * BaseBottleneckJ.expansion, stride=2)
    blk_b = BaseBottleneckJ(pg, inplanes, planes, stride=2, downsample=ds, no_relu=False)
    _, out_b = blk_b(coords, feats)
    jax.block_until_ready(out_b)
    _, ref_b = _ref_forward(blk_b, coords, feats)
    np.testing.assert_allclose(np.asarray(out_b), np.asarray(ref_b), rtol=5e-2, atol=5e-2)

    print("KERNEL_OK")
</pallas_src>

<mosaic_0001>
module attributes {stable_mosaic.version = 11 : i64} {
  func.func @_mm_stats_kernel(%arg0: i32, %arg1: memref<208x128xbf16, #tpu.memory_space<vmem>>, %arg2: memref<128x128xbf16, #tpu.memory_space<vmem>>, %arg3: memref<208x128xbf16, #tpu.memory_space<vmem>>, %arg4: memref<8x128xf32, #tpu.memory_space<vmem>>, %arg5: memref<8x128xf32, #tpu.memory_space<vmem>>) attributes {dimension_semantics = [#tpu.dimension_semantics<parallel>], iteration_bounds = array<i64: 1>, scalar_prefetch = 0 : i64, scratch_operands = 0 : i64, tpu.core_type = #tpu.core_type<tc>, window_params = [{transform_indices = @transform_0, window_bounds = array<i64: 208, 128>}, {pipeline_mode = #tpu.pipeline_mode<synchronous>, transform_indices = @transform_1, window_bounds = array<i64: 128, 128>}, {transform_indices = @transform_2, window_bounds = array<i64: 208, 128>}, {transform_indices = @transform_3, window_bounds = array<i64: 8, 128>}, {transform_indices = @transform_4, window_bounds = array<i64: 8, 128>}]} {
    %c0 = arith.constant 0 : index
    %c0_0 = arith.constant 0 : index
    %0 = vector.load %arg1[%c0, %c0_0] : memref<208x128xbf16, #tpu.memory_space<vmem>>, vector<208x128xbf16>
    %c0_1 = arith.constant 0 : index
    %c0_2 = arith.constant 0 : index
    %1 = vector.load %arg2[%c0_1, %c0_2] : memref<128x128xbf16, #tpu.memory_space<vmem>>, vector<128x128xbf16>
    %cst = arith.constant dense<0.000000e+00> : vector<208x128xf32>
    %2 = tpu.matmul %0, %1, %cst {dimension_numbers = #tpu.dot_dimension_numbers<[1], [0], [0], [1], [0, 0, 1, 1], [], []>} : vector<208x128xbf16>, vector<128x128xbf16>, vector<208x128xf32> -> vector<208x128xf32>
    %3 = arith.truncf %2 : vector<208x128xf32> to vector<208x128xbf16>
    %c0_3 = arith.constant 0 : index
    %c0_4 = arith.constant 0 : index
    %4 = vector.load %arg3[%c0_3, %c0_4] : memref<208x128xbf16, #tpu.memory_space<vmem>>, vector<208x128xbf16>
    tpu.vector_store %arg3[%c0_3, %c0_4], %3 {strides = array<i32>} : memref<208x128xbf16, #tpu.memory_space<vmem>>, vector<208x128xbf16>,
    %c208_i32 = arith.constant 208 : i32
    %5 = arith.muli %arg0, %c208_i32 : i32
    %6 = tpu.iota {dimensions = array<i32: 0>} : vector<208x128xi32>
    %7 = vector.broadcast %5 : i32 to vector<208x128xi32>
    %8 = arith.addi %6, %7 : vector<208x128xi32>
    %c200_i32 = arith.constant 200 : i32
    %9 = vector.broadcast %c200_i32 : i32 to vector<208x128xi32>
    %10 = arith.cmpi slt, %8, %9 : vector<208x128xi32>
    %cst_5 = arith.constant 0.000000e+00 : f32
    %11 = vector.broadcast %cst_5 : f32 to vector<208x128xf32>
    %12 = arith.select %10, %2, %11 : vector<208x128xi1>, vector<208x128xf32>
    %cst_6 = arith.constant dense<0.000000e+00> : vector<128xf32>
    %13 = vector.multi_reduction <add>, %12, %cst_6 [0] : vector<208x128xf32> to vector<128xf32>
    %14 = vector.shape_cast %13 : vector<128xf32> to vector<1x128xf32>
    %15 = arith.mulf %12, %12 : vector<208x128xf32>
    %cst_7 = arith.constant dense<0.000000e+00> : vector<128xf32>
    %16 = vector.multi_reduction <add>, %15, %cst_7 [0] : vector<208x128xf32> to vector<128xf32>
    %17 = vector.shape_cast %16 : vector<128xf32> to vector<1x128xf32>
    %18 = tpu.iota {dimensions = array<i32: 0>} : vector<8x128xi32>
    %c0_i32 = arith.constant 0 : i32
    %19 = vector.broadcast %c0_i32 : i32 to vector<8x128xi32>
    %20 = arith.cmpi eq, %18, %19 : vector<8x128xi32>
    %cst_8 = arith.constant 0.000000e+00 : f32
    %21 = vector.shape_cast %14 : vector<1x128xf32> to vector<1x128xf32>
    %22 = vector.broadcast %21 : vector<1x128xf32> to vector<8x128xf32>
    %23 = vector.broadcast %cst_8 : f32 to vector<8x128xf32>
    %24 = arith.select %20, %22, %23 : vector<8x128xi1>, vector<8x128xf32>
    %c0_i32_9 = arith.constant 0 : i32
    %25 = vector.broadcast %c0_i32_9 : i32 to vector<8x128xi32>
    %26 = arith.cmpi eq, %18, %25 : vector<8x128xi32>
    %cst_10 = arith.constant 0.000000e+00 : f32
    %27 = vector.shape_cast %17 : vector<1x128xf32> to vector<1x128xf32>
    %28 = vector.broadcast %27 : vector<1x128xf32> to vector<8x128xf32>
    %29 = vector.broadcast %cst_10 : f32 to vector<8x128xf32>
    %30 = arith.select %26, %28, %29 : vector<8x128xi1>, vector<8x128xf32>
    %c0_11 = arith.constant 0 : index
    %c0_12 = arith.constant 0 : index
    %31 = vector.load %arg4[%c0_11, %c0_12] : memref<8x128xf32, #tpu.memory_space<vmem>>, vector<8x128xf32>
    tpu.vector_store %arg4[%c0_11, %c0_12], %24 {strides = array<i32>} : memref<8x128xf32, #tpu.memory_space<vmem>>, vector<8x128xf32>,
    %c0_13 = arith.constant 0 : index
    %c0_14 = arith.constant 0 : index
    %32 = vector.load %arg5[%c0_13, %c0_14] : memref<8x128xf32, #tpu.memory_space<vmem>>, vector<8x128xf32>
    tpu.vector_store %arg5[%c0_13, %c0_14], %30 {strides = array<i32>} : memref<8x128xf32, #tpu.memory_space<vmem>>, vector<8x128xf32>,
    return
  }
  func.func @transform_0(%arg0: i32) -> (i32, i32) {
    %c0_i32 = arith.constant 0 : i32
    %c0_i32_0 = arith.constant 0 : i32
    return %arg0, %c0_i32 : i32, i32
  }
  func.func @transform_1(%arg0: i32) -> (i32, i32) {
    %c0_i32 = arith.constant 0 : i32
    %c0_i32_0 = arith.constant 0 : i32
    %c0_i32_1 = arith.constant 0 : i32
    return %c0_i32, %c0_i32_0 : i32, i32
  }
  func.func @transform_2(%arg0: i32) -> (i32, i32) {
    %c0_i32 = arith.constant 0 : i32
    %c0_i32_0 = arith.constant 0 : i32
    return %arg0, %c0_i32 : i32, i32
  }
  func.func @transform_3(%arg0: i32) -> (i32, i32) {
    %c0_i32 = arith.constant 0 : i32
    %c0_i32_0 = arith.constant 0 : i32
    return %arg0, %c0_i32 : i32, i32
  }
  func.func @transform_4(%arg0: i32) -> (i32, i32) {
    %c0_i32 = arith.constant 0 : i32
    %c0_i32_0 = arith.constant 0 : i32
    return %arg0, %c0_i32 : i32, i32
  }
}

</mosaic_0001>

<bundles_post_ra>
// kernel: _mm_stats.1
= control target key start
LH: loop header
LB: loop body
LE: loop exit
PB: predicated region body
PF: predicated region fallthrough
CT: control target
= control target key end

     0   :  { %10 = vsyncpa [#allocation3], 0  ;;  %s1341_s0 = inlined_call_operand.hbm [shape: bf16[208,128], index: 0, kind: input, shape index: {}]   ;;  %s1342_s1 = inlined_call_operand.hbm [shape: bf16[128,128], index: 1, kind: input, shape index: {}]   ;;  %s1343_s2 = inlined_call_operand.hbm [shape: bf16[208,128], index: 2, kind: output, shape index: {0}]   ;;  %s1344_s3 = inlined_call_operand.hbm [shape: f32[8,128], index: 3, kind: output, shape index: {1}]   ;;  %s1345_s4 = inlined_call_operand.hbm [shape: f32[8,128], index: 4, kind: output, shape index: {2}]  }
   0x1   :  { %11 = vsyncpa [#allocation6], 0 }
   0x2   :  { %12 = vsyncpa [#allocation4], 0 }
   0x3   :  { %13 = vsyncpa [#allocation9], 0  ;;  %s1128_s15 = smov [#allocation2]   ;;  %s1010_s19 = scalar_lea.hbm %s1341_s0, 1664 }
   0x4   :  { %s19_s16 = sshll.u32 %s1128_s15, 4  ;;  %p1011_p0 = scmp.ne.s32.totalorder %s1341_s0, %s1010_s19  ;;  %s20_s16 = int_to_ptr.vmem [resolvable:$true] %s19_s16 }
   0x5   :  { %p1014_p1 = scmp.lt.u32.totalorder %s1010_s19, %s1341_s0 }
   0x7   :  { %p1016_p2 = pnand %p1014_p1, %p1011_p0 }
   0x9   :  { %1019 = shalt.err (!%p1016_p2)
}
   0xa   :  { %s1020_s24 = scalar_lea.vmem %s20_s16, 1664  ;;  %p1025_p4 = scmp.lt.s32.totalorder %s20_s16, %s20_s16 }
   0xb   :  { %p1021_p3 = scmp.ne.s32.totalorder %s20_s16, %s1020_s24  ;;  %p1026_p5 = scmp.lt.s32.totalorder %s1020_s24, %s1020_s24 }
   0xd   :  { %p1027_p6 = por %p1026_p5, %p1025_p4 }
   0xf   :  { %p1028_p7 = pnand %p1027_p6, %p1021_p3 }
  0x11   :  { %1031 = shalt.err (!%p1028_p7)
}
  0x12   :  { %s1129_s25 = smov 64   ;;  %s1130_s26 = smov 4  }
  0x13   :  { %25 = dma.hbm_to_vmem [thread:$0]  %s1341_s0, 1664, %s20_s16, [#allocation3], %s1129_s25, %s1129_s25, %s1130_s26  }
  0x14   :  { %s1131_s29 = smov [#allocation5]   ;;  %s1032_s7 = scalar_lea.hbm %s1342_s1, 1024 }
  0x15   :  { %s31_s30 = sshll.u32 %s1131_s29, 4  ;;  %p1033_p8 = scmp.ne.s32.totalorder %s1342_s1, %s1032_s7  ;;  %s32_s30 = int_to_ptr.vmem [resolvable:$true] %s31_s30 }
  0x16   :  { %p1036_p9 = scmp.lt.u32.totalorder %s1032_s7, %s1342_s1 }
  0x18   :  { %p1038_p10 = pnand %p1036_p9, %p1033_p8 }
  0x1a   :  { %1041 = shalt.err (!%p1038_p10)
}
  0x1b   :  { %s1042_s12 = scalar_lea.vmem %s32_s30, 1024  ;;  %p1047_p12 = scmp.lt.s32.totalorder %s32_s30, %s32_s30 }
  0x1c   :  { %p1043_p11 = scmp.ne.s32.totalorder %s32_s30, %s1042_s12  ;;  %p1048_p13 = scmp.lt.s32.totalorder %s1042_s12, %s1042_s12 }
  0x1e   :  { %p1049_p0 = por %p1048_p13, %p1047_p12 }
  0x20   :  { %p1050_p1 = pnand %p1049_p0, %p1043_p11 }
  0x22   :  { %1053 = shalt.err (!%p1050_p1)
}
  0x23   :  { %37 = dma.hbm_to_vmem [thread:$0]  %s1342_s1, 1024, %s32_s30, [#allocation6], %s1129_s25, %s1129_s25, %s1130_s26  }
  0x24   :  { %1120 = dma.done.wait [#allocation3], 1664  }
  0x25   :  { %1121 = vsyncadd [#allocation3], 4294965632 }
  0x26   :  { %1122 = dma.done.wait [#allocation6], 1024  }
  0x27   :  { %1123 = vsyncadd [#allocation6], 4294966272  ;;  %v1132_v0 = vmov 0.0   ;;  %vm1133_vm0 = vmmov 0   ;;  %v989_v1 = vld [vmem:[#allocation5] sm:$0xff]   ;;  %v990_v2 = vld [vmem:[#allocation5 + $0x8] sm:$0xff]  }
  0x28   :  { %896 = vmatprep.subr.bf16.mxu0 %v1132_v0  ;;  %964 = vmatprep.subr.bf16.mxu1 %v1132_v0  ;;  %v991_v3 = vld [vmem:[#allocation5 + $0x10] sm:$0xff]   ;;  %v992_v4 = vld [vmem:[#allocation5 + $0x18] sm:$0xff]   ;;  %v993_v5 = vld [vmem:[#allocation5 + $0x20] sm:$0xff]   ;;  %s1134_s1 = smov [#allocation7]  }
  0x29   :  { %912 = vmatprep.mubr.msk.bf16.mxu0 %vm1133_vm0, %v1132_v0  ;;  %940 = vmatprep.mubr.msk.bf16.mxu1 %vm1133_vm0, %v1132_v0  ;;  %v994_v6 = vld [vmem:[#allocation5 + $0x28] sm:$0xff]   ;;  %v995_v7 = vld [vmem:[#allocation5 + $0x30] sm:$0xff]   ;;  %v996_v8 = vld [vmem:[#allocation5 + $0x38] sm:$0xff]   ;;  %s685_s14 = sshll.u32 %s1134_s1, 4  ;;  %s686_s14 = int_to_ptr.vmem [resolvable:$true] %s685_s14 }
  0x2a   :  { %897 = vmatpush3.bf16.msra.mxu0 %v989_v1  ;;  %972 = vmatpush3.bf16.msra.mxu1 %v989_v1  ;;  %v997_v9 = vld [vmem:[#allocation2] sm:$0xff]   ;;  %v1001_v10 = vld [vmem:[#allocation2 + $0x38] sm:$0xff]   ;;  %v998_v11 = vld [vmem:[#allocation2 + $0x8] sm:$0xff]   ;;  %s1054_s15 = scalar_lea.vmem %s686_s14, 1664  ;;  %p1059_p3 = scmp.lt.s32.totalorder %s686_s14, %s686_s14 }
  0x2b   :  { %898 = vmatprep.subr.bf16.mxu0 %v1132_v0  ;;  %965 = vmatprep.subr.bf16.mxu1 %v1132_v0  ;;  %v1003_v12 = vld [vmem:[#allocation2 + $0x40] sm:$0xff]   ;;  %v999_v13 = vld [vmem:[#allocation2 + $0x10] sm:$0xff]   ;;  %v1005_v14 = vld [vmem:[#allocation2 + $0x48] sm:$0xff]   ;;  %p1055_p2 = scmp.ne.s32.totalorder %s686_s14, %s1054_s15  ;;  %p1060_p4 = scmp.lt.s32.totalorder %s1054_s15, %s1054_s15 }
  0x2c   :  { %v1000_v15 = vld [vmem:[#allocation2 + $0x18] sm:$0xff]   ;;  %v1007_v16 = vld [vmem:[#allocation2 + $0x50] sm:$0xff]   ;;  %v1002_v17 = vld [vmem:[#allocation2 + $0x20] sm:$0xff]  }
  0x2d   :  { %v1008_v18 = vld [vmem:[#allocation2 + $0x58] sm:$0xff]   ;;  %v1004_v19 = vld [vmem:[#allocation2 + $0x28] sm:$0xff]   ;;  %v1009_v20 = vld [vmem:[#allocation2 + $0x60] sm:$0xff]   ;;  %p1061_p5 = por %p1060_p4, %p1059_p3 }
  0x2e   :  { %899 = vmatpush3.bf16.msra.mxu0 %v990_v2  ;;  %973 = vmatpush3.bf16.msra.mxu1 %v990_v2  ;;  %v1006_v21 = vld [vmem:[#allocation2 + $0x30] sm:$0xff]  }
  0x2f   :  { %900 = vmatprep.subr.bf16.mxu0 %v1132_v0  ;;  %966 = vmatprep.subr.bf16.mxu1 %v1132_v0  ;;  %p1062_p6 = pnand %p1061_p5, %p1055_p2 }
  0x32   :  { %901 = vmatpush3.bf16.msra.mxu0 %v991_v3  ;;  %974 = vmatpush3.bf16.msra.mxu1 %v991_v3 }
  0x33   :  { %902 = vmatprep.subr.bf16.mxu0 %v1132_v0  ;;  %967 = vmatprep.subr.bf16.mxu1 %v1132_v0 }
  0x36   :  { %903 = vmatpush3.bf16.msra.mxu0 %v992_v4  ;;  %975 = vmatpush3.bf16.msra.mxu1 %v992_v4 }
  0x37   :  { %904 = vmatprep.subr.bf16.mxu0 %v1132_v0  ;;  %968 = vmatprep.subr.bf16.mxu1 %v1132_v0 }
  0x3a   :  { %905 = vmatpush3.bf16.msra.mxu0 %v993_v5  ;;  %976 = vmatpush3.bf16.msra.mxu1 %v993_v5 }
  0x3b   :  { %906 = vmatprep.subr.bf16.mxu0 %v1132_v0  ;;  %969 = vmatprep.subr.bf16.mxu1 %v1132_v0 }
  0x3e   :  { %907 = vmatpush3.bf16.msra.mxu0 %v994_v6  ;;  %977 = vmatpush3.bf16.msra.mxu1 %v994_v6 }
  0x3f   :  { %908 = vmatprep.subr.bf16.mxu0 %v1132_v0  ;;  %970 = vmatprep.subr.bf16.mxu1 %v1132_v0 }
  0x42   :  { %909 = vmatpush3.bf16.msra.mxu0 %v995_v7  ;;  %978 = vmatpush3.bf16.msra.mxu1 %v995_v7 }
  0x43   :  { %910 = vmatprep.subr.bf16.mxu0 %v1132_v0  ;;  %971 = vmatprep.subr.bf16.mxu1 %v1132_v0 }
  0x46   :  { %911 = vmatpush3.bf16.msra.mxu0 %v996_v8  ;;  %979 = vmatpush3.bf16.msra.mxu1 %v996_v8 }
  0x49   :  { %913 = vmatmul.mubr.bf16.vlgmr.msra.gmra.mrb[0].mxu0 %v997_v9  ;;  %941 = vmatmul.mubr.bf16.vlgmr.msra.gmra.mrb[0].mxu1 %v1001_v10 }
  0x4a   :  { %916 = vmatprep.mubr.msk.bf16.mxu0 %vm1133_vm0, %v1132_v0  ;;  %944 = vmatprep.mubr.msk.bf16.mxu1 %vm1133_vm0, %v1132_v0 }
  0x51   :  { %917 = vmatmul.mubr.bf16.gmra.mrb[4].mxu0 %v998_v11  ;;  %945 = vmatmul.mubr.bf16.gmra.mrb[4].mxu1 %v1003_v12 }
  0x52   :  { %920 = vmatprep.mubr.msk.bf16.mxu0 %vm1133_vm0, %v1132_v0  ;;  %948 = vmatprep.mubr.msk.bf16.mxu1 %vm1133_vm0, %v1132_v0 }
  0x59   :  { %921 = vmatmul.mubr.bf16.gmra.mrb[8].mxu0 %v999_v13  ;;  %949 = vmatmul.mubr.bf16.gmra.mrb[8].mxu1 %v1005_v14 }
  0x5a   :  { %924 = vmatprep.mubr.msk.bf16.mxu0 %vm1133_vm0, %v1132_v0  ;;  %952 = vmatprep.mubr.msk.bf16.mxu1 %vm1133_vm0, %v1132_v0 }
  0x61   :  { %925 = vmatmul.mubr.bf16.gmra.mrb[12].mxu0 %v1000_v15  ;;  %953 = vmatmul.mubr.bf16.gmra.mrb[12].mxu1 %v1007_v16 }
  0x62   :  { %928 = vmatprep.mubr.msk.bf16.mxu0 %vm1133_vm0, %v1132_v0  ;;  %956 = vmatprep.mubr.msk.bf16.mxu1 %vm1133_vm0, %v1132_v0 }
  0x69   :  { %929 = vmatmul.mubr.bf16.gmra.mrb[16].mxu0 %v1002_v17  ;;  %957 = vmatmul.mubr.bf16.gmra.mrb[16].mxu1 %v1008_v18 }
  0x6a   :  { %932 = vmatprep.mubr.msk.bf16.mxu0 %vm1133_vm0, %v1132_v0  ;;  %960 = vmatprep.mubr.msk.bf16.mxu1 %vm1133_vm0, %v1132_v0 }
  0x71   :  { %933 = vmatmul.mubr.bf16.gmra.mrb[20].mxu0 %v1004_v19  ;;  %961 = vmatmul.mubr.bf16.gmra.mrb[20].mxu1 %v1009_v20 }
  0x72   :  { %936 = vmatprep.mubr.msk.bf16.mxu0 %vm1133_vm0, %v1132_v0 }
  0x79   :  { %937 = vmatmul.mubr.bf16.gmra.mrb[24].mxu0 %v1006_v21 }
 0x11c   :  { %v247_v22 = vpop.f32.mrb[0].mxu0  ;;  %v1234_v23 = vpop.f32.mrb[0].mxu1 }
 0x11d   :  { %v914_v24 = vpop.f32.mrb[1].mxu0  ;;  %v942_v25 = vpop.f32.mrb[1].mxu1  ;;  %v618_v26 = vmul.f32 %v247_v22, %v247_v22 }
 0x11e   :  { %v250_v27 = vpop.f32.mrb[2].mxu0  ;;  %v1236_v28 = vpop.f32.mrb[2].mxu1 }
 0x11f   :  { %v801_v29 = vpack.c.bf16 %v250_v27, %v247_v22  ;;  %v587_v30 = vadd.f32 %v250_v27, %v247_v22  ;;  %v619_v31 = vmul.f32 %v250_v27, %v250_v27  ;;  %v915_v32 = vpop.f32.mrb[3].mxu0  ;;  %v836_v33 = vpack.c.bf16 %v1236_v28, %v1234_v23  ;;  %v943_v34 = vpop.f32.mrb[3].mxu1 }
 0x121   :  { %802 = vst [vmem:[#allocation7] sm:$0xff] %v801_v29   ;;  %v644_v35 = vadd.f32 %v619_v31, %v618_v26  ;;  %869 = vst [vmem:[#allocation7 + $0x38] sm:$0xff] %v836_v33  }
 0x124   :  { %v255_v36 = vpop.f32.mrb[4].mxu0  ;;  %v1240_v37 = vpop.f32.mrb[4].mxu1 }
 0x125   :  { %v588_v38 = vadd.f32 %v587_v30, %v255_v36  ;;  %v620_v39 = vmul.f32 %v255_v36, %v255_v36  ;;  %v918_v40 = vpop.f32.mrb[5].mxu0  ;;  %v946_v41 = vpop.f32.mrb[5].mxu1 }
 0x126   :  { %v258_v42 = vpop.f32.mrb[6].mxu0  ;;  %v1242_v43 = vpop.f32.mrb[6].mxu1 }
 0x127   :  { %v645_v44 = vadd.f32 %v644_v35, %v620_v39  ;;  %v806_v45 = vpack.c.bf16 %v258_v42, %v255_v36  ;;  %v589_v46 = vadd.f32 %v588_v38, %v258_v42  ;;  %v621_v47 = vmul.f32 %v258_v42, %v258_v42  ;;  %v919_v48 = vpop.f32.mrb[7].mxu0  ;;  %v947_v49 = vpop.f32.mrb[7].mxu1 }
 0x128   :  { %v841_v50 = vpack.c.bf16 %v1242_v43, %v1240_v37 }
 0x129   :  { %863 = vst [vmem:[#allocation7 + $0x8] sm:$0xff] %v806_v45   ;;  %v646_v51 = vadd.f32 %v645_v44, %v621_v47 }
 0x12a   :  { %870 = vst [vmem:[#allocation7 + $0x40] sm:$0xff] %v841_v50  }
 0x12c   :  { %v263_v52 = vpop.f32.mrb[8].mxu0  ;;  %v1246_v53 = vpop.f32.mrb[8].mxu1 }
 0x12d   :  { %v590_v54 = vadd.f32 %v589_v46, %v263_v52  ;;  %v622_v55 = vmul.f32 %v263_v52, %v263_v52  ;;  %v922_v56 = vpop.f32.mrb[9].mxu0  ;;  %v950_v57 = vpop.f32.mrb[9].mxu1 }
 0x12e   :  { %v266_v58 = vpop.f32.mrb[10].mxu0  ;;  %v1248_v59 = vpop.f32.mrb[10].mxu1 }
 0x12f   :  { %v647_v60 = vadd.f32 %v646_v51, %v622_v55  ;;  %v811_v61 = vpack.c.bf16 %v266_v58, %v263_v52  ;;  %v591_v62 = vadd.f32 %v590_v54, %v266_v58  ;;  %v623_v63 = vmul.f32 %v266_v58, %v266_v58  ;;  %v923_v0 = vpop.f32.mrb[11].mxu0  ;;  %v951_v1 = vpop.f32.mrb[11].mxu1 }
 0x130   :  { %v846_v2 = vpack.c.bf16 %v1248_v59, %v1246_v53 }
 0x131   :  { %864 = vst [vmem:[#allocation7 + $0x10] sm:$0xff] %v811_v61   ;;  %v648_v3 = vadd.f32 %v647_v60, %v623_v63 }
 0x132   :  { %871 = vst [vmem:[#allocation7 + $0x48] sm:$0xff] %v846_v2  }
 0x134   :  { %v271_v4 = vpop.f32.mrb[12].mxu0  ;;  %v1252_v5 = vpop.f32.mrb[12].mxu1 }
 0x135   :  { %v592_v6 = vadd.f32 %v591_v62, %v271_v4  ;;  %v624_v7 = vmul.f32 %v271_v4, %v271_v4  ;;  %v926_v8 = vpop.f32.mrb[13].mxu0  ;;  %v954_v9 = vpop.f32.mrb[13].mxu1 }
 0x136   :  { %v274_v10 = vpop.f32.mrb[14].mxu0  ;;  %v1254_v11 = vpop.f32.mrb[14].mxu1 }
 0x137   :  { %v649_v12 = vadd.f32 %v648_v3, %v624_v7  ;;  %v816_v13 = vpack.c.bf16 %v274_v10, %v271_v4  ;;  %v593_v14 = vadd.f32 %v592_v6, %v274_v10  ;;  %v625_v15 = vmul.f32 %v274_v10, %v274_v10  ;;  %v927_v16 = vpop.f32.mrb[15].mxu0  ;;  %v955_v17 = vpop.f32.mrb[15].mxu1 }
 0x138   :  { %v851_v18 = vpack.c.bf16 %v1254_v11, %v1252_v5  ;;  %v632_v4 = vmul.f32 %v1234_v23, %v1234_v23 }
 0x139   :  { %865 = vst [vmem:[#allocation7 + $0x18] sm:$0xff] %v816_v13   ;;  %v650_v19 = vadd.f32 %v649_v12, %v625_v15 }
 0x13a   :  { %872 = vst [vmem:[#allocation7 + $0x50] sm:$0xff] %v851_v18  }
 0x13c   :  { %v279_v20 = vpop.f32.mrb[16].mxu0  ;;  %v1258_v21 = vpop.f32.mrb[16].mxu1 }
 0x13d   :  { %v594_v22 = vadd.f32 %v593_v14, %v279_v20  ;;  %v626_v24 = vmul.f32 %v279_v20, %v279_v20  ;;  %v930_v25 = vpop.f32.mrb[17].mxu0  ;;  %v958_v26 = vpop.f32.mrb[17].mxu1 }
 0x13e   :  { %v282_v27 = vpop.f32.mrb[18].mxu0  ;;  %v1260_v29 = vpop.f32.mrb[18].mxu1 }
 0x13f   :  { %v651_v30 = vadd.f32 %v650_v19, %v626_v24  ;;  %v821_v31 = vpack.c.bf16 %v282_v27, %v279_v20  ;;  %v595_v32 = vadd.f32 %v594_v22, %v282_v27  ;;  %v627_v33 = vmul.f32 %v282_v27, %v282_v27  ;;  %v931_v34 = vpop.f32.mrb[19].mxu0  ;;  %v959_v35 = vpop.f32.mrb[19].mxu1 }
 0x140   :  { %v856_v36 = vpack.c.bf16 %v1260_v29, %v1258_v21 }
 0x141   :  { %866 = vst [vmem:[#allocation7 + $0x20] sm:$0xff] %v821_v31   ;;  %v652_v38 = vadd.f32 %v651_v30, %v627_v33 }
 0x142   :  { %873 = vst [vmem:[#allocation7 + $0x58] sm:$0xff] %v856_v36  }
 0x144   :  { %v287_v39 = vpop.f32.mrb[20].mxu0  ;;  %v1264_v40 = vpop.f32.mrb[20].mxu1 }
 0x145   :  { %v596_v41 = vadd.f32 %v595_v32, %v287_v39  ;;  %v628_v42 = vmul.f32 %v287_v39, %v287_v39  ;;  %v934_v44 = vpop.f32.mrb[21].mxu0  ;;  %v962_v45 = vpop.f32.mrb[21].mxu1 }
 0x146   :  { %v290_v46 = vpop.f32.mrb[22].mxu0  ;;  %v346_v47 = vpop.f32.mrb[22].mxu1 }
 0x147   :  { %v653_v48 = vadd.f32 %v652_v38, %v628_v42  ;;  %v826_v49 = vpack.c.bf16 %v290_v46, %v287_v39  ;;  %v597_v50 = vadd.f32 %v596_v41, %v290_v46  ;;  %v629_v51 = vmul.f32 %v290_v46, %v290_v46  ;;  %v935_v52 = vpop.f32.mrb[23].mxu0  ;;  %v963_v54 = vpop.f32.mrb[23].mxu1 }
 0x148   :  { %v861_v55 = vpack.c.bf16 %v346_v47, %v1264_v40 }
 0x149   :  { %867 = vst [vmem:[#allocation7 + $0x28] sm:$0xff] %v826_v49   ;;  %v654_v56 = vadd.f32 %v653_v48, %v629_v51 }
 0x14a   :  { %874 = vst [vmem:[#allocation7 + $0x60] sm:$0xff] %v861_v55  }
 0x14c   :  { %v295_v57 = vpop.f32.mrb[24].mxu0 }
 0x14d   :  { %v598_v58 = vadd.f32 %v597_v50, %v295_v57  ;;  %v630_v60 = vmul.f32 %v295_v57, %v295_v57  ;;  %v938_v61 = vpop.f32.mrb[25].mxu0 }
 0x14e   :  { %v298_v62 = vpop.f32.mrb[26].mxu0 }
 0x14f   :  { %v655_v63 = vadd.f32 %v654_v56, %v630_v60  ;;  %v831_v0 = vpack.c.bf16 %v298_v62, %v295_v57  ;;  %v599_v1 = vadd.f32 %v598_v58, %v298_v62  ;;  %v631_v2 = vmul.f32 %v298_v62, %v298_v62  ;;  %v939_v3 = vpop.f32.mrb[27].mxu0 }
 0x151   :  { %868 = vst [vmem:[#allocation7 + $0x30] sm:$0xff] %v831_v0   ;;  %v600_v6 = vadd.f32 %v599_v1, %v1234_v23  ;;  %v656_v7 = vadd.f32 %v655_v63, %v631_v2 }
 0x152   :  { %1065 = shalt.err (!%p1062_p6)
}
 0x153   :  { %s1066_s18 = scalar_lea.hbm %s1343_s2, 1664 }
 0x154   :  { %p1067_p7 = scmp.ne.s32.totalorder %s1343_s2, %s1066_s18  ;;  %p1070_p8 = scmp.lt.u32.totalorder %s1066_s18, %s1343_s2 }
 0x156   :  { %p1072_p9 = pnand %p1070_p8, %p1067_p7 }
 0x158   :  { %1075 = shalt.err (!%p1072_p9)
}
 0x159   :  { %691 = dma.vmem_to_hbm [thread:$0]  %s686_s14, 1664, %s1343_s2, [#allocation4], %s1129_s25, %s1129_s25, %s1130_s26   ;;  %v633_v23 = vmul.f32 %v1236_v28, %v1236_v28  ;;  %v601_v8 = vadd.f32 %v600_v6, %v1236_v28  ;;  %v657_v9 = vadd.f32 %v656_v7, %v632_v4  ;;  %v634_v10 = vmul.f32 %v1240_v37, %v1240_v37 }
 0x15a   :  { %v635_v14 = vmul.f32 %v1242_v43, %v1242_v43  ;;  %v636_v17 = vmul.f32 %v1246_v53, %v1246_v53  ;;  %v637_v28 = vmul.f32 %v1248_v59, %v1248_v59  ;;  %v638_v24 = vmul.f32 %v1252_v5, %v1252_v5  ;;  %s1135_s2 = smov [#allocation8]   ;;  %s1136_s26 = smov [#allocation10]  }
 0x15b   :  { %v602_v12 = vadd.f32 %v601_v8, %v1240_v37  ;;  %v658_v13 = vadd.f32 %v657_v9, %v633_v23  ;;  %v639_v27 = vmul.f32 %v1254_v11, %v1254_v11  ;;  %v640_v31 = vmul.f32 %v1258_v21, %v1258_v21  ;;  %s698_s25 = sshll.u32 %s1135_s2, 4  ;;  %s708_s27 = sshll.u32 %s1136_s26, 4  ;;  %s699_s25 = int_to_ptr.vmem [resolvable:$true] %s698_s25  ;;  %s709_s27 = int_to_ptr.vmem [resolvable:$true] %s708_s27 }
 0x15c   :  { %v641_v33 = vmul.f32 %v1260_v29, %v1260_v29  ;;  %v481_v38 = vlaneseq  ;;  %s1076_s28 = scalar_lea.vmem %s699_s25, 128  ;;  %p1081_p11 = scmp.lt.s32.totalorder %s699_s25, %s699_s25 }
 0x15d   :  { %v659_v15 = vadd.f32 %v658_v13, %v634_v10  ;;  %v603_v16 = vadd.f32 %v602_v12, %v1242_v43  ;;  %p1077_p10 = scmp.ne.s32.totalorder %s699_s25, %s1076_s28  ;;  %p1082_p12 = scmp.lt.s32.totalorder %s1076_s28, %s1076_s28 }
 0x15f   :  { %v604_v18 = vadd.f32 %v603_v16, %v1246_v53  ;;  %v660_v19 = vadd.f32 %v659_v15, %v635_v14  ;;  %p1083_p13 = por %p1082_p12, %p1081_p11 }
 0x161   :  { %v605_v20 = vadd.f32 %v604_v18, %v1248_v59  ;;  %v661_v22 = vadd.f32 %v660_v19, %v636_v17  ;;  %p1084_p0 = pnand %p1083_p13, %p1077_p10 }
 0x163   :  { %v606_v37 = vadd.f32 %v605_v20, %v1252_v5  ;;  %v662_v25 = vadd.f32 %v661_v22, %v637_v28  ;;  %v642_v5 = vmul.f32 %v1264_v40, %v1264_v40 }
 0x165   :  { %v663_v26 = vadd.f32 %v662_v25, %v638_v24  ;;  %v607_v43 = vadd.f32 %v606_v37, %v1254_v11 }
 0x167   :  { %v664_v53 = vadd.f32 %v663_v26, %v639_v27  ;;  %v608_v30 = vadd.f32 %v607_v43, %v1258_v21  ;;  %v482_v21 = vshrl.u32 %v481_v38, 7 }
 0x169   :  { %v665_v59 = vadd.f32 %v664_v53, %v640_v31  ;;  %v609_v32 = vadd.f32 %v608_v30, %v1260_v29  ;;  %vm675_vm1 = vcmp.eq.s32.totalorder %v482_v21, 0 }
 0x16b   :  { %v666_v34 = vadd.f32 %v665_v59, %v641_v33  ;;  %v610_v35 = vadd.f32 %v609_v32, %v1264_v40 }
 0x16d   :  { %v612_v36 = vrot.slane %v610_v35, 4  ;;  %v667_v11 = vadd.f32 %v666_v34, %v642_v5 }
 0x16f   :  { %v613_v39 = vadd.f32 %v612_v36, %v610_v35  ;;  %v669_v41 = vrot.slane %v667_v11, 4 }
 0x171   :  { %v614_v42 = vrot.slane %v613_v39, 2  ;;  %v670_v44 = vadd.f32 %v669_v41, %v667_v11 }
 0x173   :  { %v671_v45 = vrot.slane %v670_v44, 2  ;;  %v615_v46 = vadd.f32 %v614_v42, %v613_v39 }
 0x175   :  { %v616_v47 = vrot.slane %v615_v46, 1  ;;  %v672_v29 = vadd.f32 %v671_v45, %v670_v44 }
 0x177   :  { %v617_v48 = vadd.f32 %v616_v47, %v615_v46  ;;  %v673_v49 = vrot.slane %v672_v29, 1 }
 0x179   :  { %v676_v40 = vsel %vm675_vm1, %v617_v48, 0.0  ;;  %v674_v50 = vadd.f32 %v673_v49, %v672_v29 }
 0x17a   :  { %678 = vst [vmem:[#allocation8] sm:$0xff] %v676_v40 }
 0x17b   :  { %1087 = shalt.err (!%p1084_p0)
}
 0x17c   :  { %s1088_s5 = scalar_lea.hbm %s1344_s3, 128 }
 0x17d   :  { %p1089_p1 = scmp.ne.s32.totalorder %s1344_s3, %s1088_s5  ;;  %p1092_p2 = scmp.lt.u32.totalorder %s1088_s5, %s1344_s3 }
 0x17f   :  { %p1094_p3 = pnand %p1092_p2, %p1089_p1 }
 0x181   :  { %1097 = shalt.err (!%p1094_p3)
}
 0x182   :  { %701 = dma.vmem_to_hbm [thread:$0]  %s699_s25, 128, %s1344_s3, [#allocation9]   ;;  %v677_v51 = vsel %vm675_vm1, %v674_v50, 0.0 }
 0x183   :  { %679 = vst [vmem:[#allocation10] sm:$0xff] %v677_v51  ;;  %s1098_s12 = scalar_lea.vmem %s709_s27, 128  ;;  %p1103_p5 = scmp.lt.s32.totalorder %s709_s27, %s709_s27 }
 0x184   :  { %p1099_p4 = scmp.ne.s32.totalorder %s709_s27, %s1098_s12  ;;  %p1104_p6 = scmp.lt.s32.totalorder %s1098_s12, %s1098_s12 }
 0x186   :  { %p1105_p7 = por %p1104_p6, %p1103_p5 }
 0x188   :  { %p1106_p8 = pnand %p1105_p7, %p1099_p4 }
 0x18a   :  { %1109 = shalt.err (!%p1106_p8)
}
 0x18b   :  { %s1110_s1 = scalar_lea.hbm %s1345_s4, 128 }
 0x18c   :  { %p1111_p9 = scmp.ne.s32.totalorder %s1345_s4, %s1110_s1  ;;  %p1114_p10 = scmp.lt.u32.totalorder %s1110_s1, %s1345_s4 }
 0x18e   :  { %p1116_p11 = pnand %p1114_p10, %p1111_p9 }
 0x190   :  { %1119 = shalt.err (!%p1116_p11)
}
 0x191   :  { %711 = dma.vmem_to_hbm [thread:$0]  %s709_s27, 128, %s1345_s4, [#allocation9]  }
 0x192   :  { %1124 = dma.done.wait [#allocation4], 1664  }
 0x193   :  { %1125 = vsyncadd [#allocation4], 4294965632 }
 0x194   :  { %1126 = dma.done.wait [#allocation9], 256  }
 0x195   :  { %1127 = vsyncadd [#allocation9], 4294967040 }
 0x196   :  { %721 = vsyncpa [#allocation3], 1 }
 0x197   :  { %722 = vsyncpa [#allocation6], 1 }
 0x198   :  { %723 = vsyncpa [#allocation4], 1 }
 0x199   :  { %724 = vsyncpa [#allocation9], 1 }

</bundles_post_ra>
